<compile_context>
chip_gen: v6e
topology: v6e:2x2x1
jax: 0.10.0
libtpu: 0.0.40
codegen_flags: <defaults>
</compile_context>

<pallas_src>
import functools

import jax
import jax.numpy as jnp
from jax.experimental import pallas as pl
from jax.experimental.pallas import tpu as pltpu

_LANE = 128


def _round_up(x, m):
    return (x + m - 1) // m * m


def _cdiv(a, b):
    return (a + b - 1) // b


def _vmem_capacity_bytes():
    try:
        return int(pltpu.get_tpu_info().vmem_capacity_bytes)
    except Exception:
        return 64 * 1024 * 1024  # conservative (v7x per-TC VMEM)


def _divisor_tile(full, want):
    """Largest multiple of 128 that is <= want and divides `full` (full % 128 == 0)."""
    if full <= want:
        return full
    t = (want // _LANE) * _LANE
    while full % t != 0:
        t -= _LANE
    return t


def _linear_kernel(x_ref, w_ref, b_ref, out_ref, acc_ref, *, compute_dtype):
    k = pl.program_id(2)

    @pl.when(k == 0)
    def _init():
        acc_ref[...] = jnp.zeros_like(acc_ref)

    x = x_ref[...]
    w = w_ref[...]
    if compute_dtype is not None:
        # In-kernel cast (VPU work hidden under the MXU) -- no extra HBM pass.
        x = x.astype(compute_dtype)
        w = w.astype(compute_dtype)
    acc_ref[...] += jnp.dot(x, w, preferred_element_type=jnp.float32)

    @pl.when(k == pl.num_programs(2) - 1)
    def _finalize():
        # Bias add in the f32 epilogue; b_ref is (1, tn) and broadcasts.
        out_ref[...] = (acc_ref[...] + b_ref[...].astype(jnp.float32)).astype(
            out_ref.dtype
        )


def _linear_forward(x, w_p, b_p, out_features, *, block_m, block_n, block_k,
                    compute_dtype):
    B, In = x.shape
    in_p, out_p = w_p.shape
    out_dtype = x.dtype

    # Zero-pad the contraction dim of x to match the zero-padded weight rows.
    if in_p != In:
        x = jnp.pad(x, ((0, 0), (0, in_p - In)))

    sub = 16 if compute_dtype == jnp.bfloat16 else 8
    tn = _divisor_tile(out_p, block_n)
    tk = _divisor_tile(in_p, block_k)
    tm = _round_up(min(block_m, _round_up(B, sub)), sub)

    xi = jnp.dtype(x.dtype).itemsize
    wi = jnp.dtype(w_p.dtype).itemsize
    bi = jnp.dtype(b_p.dtype).itemsize
    oi = jnp.dtype(out_dtype).itemsize

    def footprint(tm_):
        # double-buffered x / w / bias / out tiles + f32 accumulator
        return (2 * tm_ * tk * xi + 2 * tk * tn * wi + 2 * tn * bi
                + 2 * tm_ * tn * oi + tm_ * tn * 4)

    cap = _vmem_capacity_bytes()
    budget = min(cap - 16 * 1024 * 1024, int(cap * 0.75))
    while tm > sub and footprint(tm) > budget:
        tm = _round_up(tm // 2, sub)

    # Give the "parallel" (M x N) grid >= 2 steps when possible so a v7x
    # megacore can occupy both TensorCores.
    if (out_p // tn) * _cdiv(B, tm) < 2 and B > sub:
        tm = _round_up(_cdiv(B, 2), sub)

    b_pad = _round_up(B, tm)
    if b_pad != B:
        x = jnp.pad(x, ((0, b_pad - B), (0, 0)))

    grid = (b_pad // tm, out_p // tn, in_p // tk)

    vmem_bytes = footprint(tm)
    compiler_kwargs = dict(
        dimension_semantics=("parallel", "parallel", "arbitrary"))
    # v5e's default scoped VMEM limit is 16 MiB (v6e/v7x: 32 MiB). Raise it if
    # we might exceed the smallest default, capped by physical capacity.
    if vmem_bytes > 16 * 1024 * 1024:
        compiler_kwargs["vmem_limit_bytes"] = min(
            int(vmem_bytes * 1.5), cap - 4 * 1024 * 1024)

    cost = pl.CostEstimate(
        flops=2 * b_pad * in_p * out_p,
        transcendentals=0,
        bytes_accessed=(b_pad * in_p * xi                       # x tiles
                        + (b_pad // tm) * in_p * out_p * wi     # weight re-streamed per M tile
                        + out_p * bi
                        + b_pad * out_p * oi),
    )

    kernel = functools.partial(_linear_kernel, compute_dtype=compute_dtype)
    out_padded = pl.pallas_call(
        kernel,
        out_shape=jax.ShapeDtypeStruct((b_pad, out_p), out_dtype),
        grid_spec=pltpu.PrefetchScalarGridSpec(
            num_scalar_prefetch=0,
            grid=grid,
            in_specs=[
                pl.BlockSpec((tm, tk), lambda i, j, k: (i, k)),   # x tile
                pl.BlockSpec((tk, tn), lambda i, j, k: (k, j)),   # weight tile
                pl.BlockSpec((1, tn), lambda i, j, k: (0, j)),    # bias tile
            ],
            out_specs=pl.BlockSpec((tm, tn), lambda i, j, k: (i, j)),
            scratch_shapes=[pltpu.VMEM((tm, tn), jnp.float32)],
        ),
        compiler_params=pltpu.CompilerParams(**compiler_kwargs),
        cost_estimate=cost,
    )(x, w_p, b_p)

    return out_padded[:B, :out_features]


class LinearClassificationModule:
    """Pallas TPU equivalent of torch.nn.Linear(input_size, output_size).

    Weight/bias are padded (In, Out -> multiples of 128) and optionally cast
    to the compute dtype ONCE at construction, outside the per-call hot path.
    Set compute_dtype=jnp.bfloat16 for the bf16 MXU fast path on v5e/v6e/v7x
    (f32 accumulation is kept; expect ~1e-2 tolerance vs. f32 reference).
    """

    def __init__(self, w, b, *, block_m=512, block_n=256, block_k=512,
                 compute_dtype=None):
        In, Out = w.shape
        b = jnp.reshape(b, (1, Out))
        self.in_features = In
        self.out_features = Out

        in_p = _round_up(In, _LANE)
        out_p = _round_up(Out, _LANE)
        w_p = jnp.pad(w, ((0, in_p - In), (0, out_p - Out)))
        b_p = jnp.pad(b, ((0, 0), (0, out_p - Out)))
        if compute_dtype is not None:
            # Store weights in the compute dtype in HBM (halves weight DMA
            # bytes); x is cast inside the kernel instead of the wrapper.
            w_p = w_p.astype(compute_dtype)
        self.w_p = w_p
        self.b_p = b_p
        self._kwargs = dict(block_m=block_m, block_n=block_n, block_k=block_k,
                            compute_dtype=compute_dtype)

    def __call__(self, x):
        return _linear_forward(x, self.w_p, self.b_p, self.out_features,
                               **self._kwargs)


def init_params(key, input_size, output_size, dtype=jnp.float32):
    # Mimic PyTorch nn.Linear default init: uniform +/- 1/sqrt(fan_in).
    k1, k2 = jax.random.split(key)
    bound = 1.0 / (input_size ** 0.5)
    w = jax.random.uniform(k1, (input_size, output_size), dtype, -bound, bound)
    b = jax.random.uniform(k2, (1, output_size), dtype, -bound, bound)
    return w, b


if __name__ == "__main__":
    batch = 128
    input_size = 64
    output_size = 32

    key = jax.random.PRNGKey(0)
    kx, kp = jax.random.split(key)
    x = jax.random.normal(kx, (batch, input_size), jnp.float32)
    w, b = init_params(kp, input_size, output_size)

    # Default f32 compute path -> exact (1e-5) parity with the reference.
    # The small shapes still exercise the M/N/K tiled grid: In is padded
    # 64 -> 128, Out 32 -> 128, and the batch is split into 2 parallel tiles.
    module = LinearClassificationModule(w, b)
    out = jax.block_until_ready(module(x))

    # Plain-JAX reference (identical to PyTorch nn.Linear forward).
    ref = x @ w + b
    assert out.shape == (batch, output_size)
    assert jnp.allclose(out, ref, atol=1e-5, rtol=1e-5)

    print("KERNEL_OK")
</pallas_src>

<mosaic_0001>
module attributes {stable_mosaic.version = 11 : i64} {
  func.func @_linear_kernel(%arg0: i32, %arg1: i32, %arg2: i32, %arg3: memref<64x128xf32, #tpu.memory_space<vmem>>, %arg4: memref<128x128xf32, #tpu.memory_space<vmem>>, %arg5: memref<1x128xf32, #tpu.memory_space<vmem>>, %arg6: memref<64x128xf32, #tpu.memory_space<vmem>>, %arg7: memref<64x128xf32, #tpu.memory_space<vmem>>) attributes {dimension_semantics = [#tpu.dimension_semantics<parallel>, #tpu.dimension_semantics<parallel>, #tpu.dimension_semantics<arbitrary>], iteration_bounds = array<i64: 2, 1, 1>, scalar_prefetch = 0 : i64, scratch_operands = 1 : i64, tpu.core_type = #tpu.core_type<tc>, window_params = [{transform_indices = @transform_0, window_bounds = array<i64: 64, 128>}, {transform_indices = @transform_1, window_bounds = array<i64: 128, 128>}, {transform_indices = @transform_2, window_bounds = array<i64: 1, 128>}, {transform_indices = @transform_3, window_bounds = array<i64: 64, 128>}]} {
    %c0_i32 = arith.constant 0 : i32
    %0 = arith.cmpi eq, %arg2, %c0_i32 : i32
    %1 = arith.extui %0 : i1 to i32
    %c0_i32_0 = arith.constant 0 : i32
    %2 = arith.cmpi ne, %1, %c0_i32_0 : i32
    scf.if %2 {
      %cst_10 = arith.constant 0.000000e+00 : f32
      %12 = vector.broadcast %cst_10 : f32 to vector<64x128xf32>
      %c0_11 = arith.constant 0 : index
      %c0_12 = arith.constant 0 : index
      %13 = vector.load %arg7[%c0_11, %c0_12] : memref<64x128xf32, #tpu.memory_space<vmem>>, vector<64x128xf32>
      tpu.vector_store %arg7[%c0_11, %c0_12], %12 {strides = array<i32>} : memref<64x128xf32, #tpu.memory_space<vmem>>, vector<64x128xf32>,
    } else {
    }
    %c0 = arith.constant 0 : index
    %c0_1 = arith.constant 0 : index
    %3 = vector.load %arg3[%c0, %c0_1] : memref<64x128xf32, #tpu.memory_space<vmem>>, vector<64x128xf32>
    %c0_2 = arith.constant 0 : index
    %c0_3 = arith.constant 0 : index
    %4 = vector.load %arg4[%c0_2, %c0_3] : memref<128x128xf32, #tpu.memory_space<vmem>>, vector<128x128xf32>
    %c0_4 = arith.constant 0 : index
    %c0_5 = arith.constant 0 : index
    %5 = vector.load %arg7[%c0_4, %c0_5] : memref<64x128xf32, #tpu.memory_space<vmem>>, vector<64x128xf32>
    %cst = arith.constant dense<0.000000e+00> : vector<64x128xf32>
    %6 = tpu.matmul %3, %4, %cst {dimension_numbers = #tpu.dot_dimension_numbers<[1], [0], [0], [1], [0, 0, 1, 1], [], []>} : vector<64x128xf32>, vector<128x128xf32>, vector<64x128xf32> -> vector<64x128xf32>
    %7 = arith.addf %5, %6 : vector<64x128xf32>
    %c0_6 = arith.constant 0 : index
    %c0_7 = arith.constant 0 : index
    %8 = vector.load %arg7[%c0_6, %c0_7] : memref<64x128xf32, #tpu.memory_space<vmem>>, vector<64x128xf32>
    tpu.vector_store %arg7[%c0_6, %c0_7], %7 {strides = array<i32>} : memref<64x128xf32, #tpu.memory_space<vmem>>, vector<64x128xf32>,
    %c0_i32_8 = arith.constant 0 : i32
    %9 = arith.cmpi eq, %arg2, %c0_i32_8 : i32
    %10 = arith.extui %9 : i1 to i32
    %c0_i32_9 = arith.constant 0 : i32
    %11 = arith.cmpi ne, %10, %c0_i32_9 : i32
    scf.if %11 {
      %c0_10 = arith.constant 0 : index
      %c0_11 = arith.constant 0 : index
      %12 = vector.load %arg7[%c0_10, %c0_11] : memref<64x128xf32, #tpu.memory_space<vmem>>, vector<64x128xf32>
      %c0_12 = arith.constant 0 : index
      %c0_13 = arith.constant 0 : index
      %13 = vector.load %arg5[%c0_12, %c0_13] : memref<1x128xf32, #tpu.memory_space<vmem>>, vector<1x128xf32>
      %14 = vector.broadcast %13 : vector<1x128xf32> to vector<64x128xf32>
      %15 = arith.addf %12, %14 : vector<64x128xf32>
      %c0_14 = arith.constant 0 : index
      %c0_15 = arith.constant 0 : index
      %16 = vector.load %arg6[%c0_14, %c0_15] : memref<64x128xf32, #tpu.memory_space<vmem>>, vector<64x128xf32>
      tpu.vector_store %arg6[%c0_14, %c0_15], %15 {strides = array<i32>} : memref<64x128xf32, #tpu.memory_space<vmem>>, vector<64x128xf32>,
    } else {
    }
    return
  }
  func.func @transform_0(%arg0: i32, %arg1: i32, %arg2: i32) -> (i32, i32) {
    %c0_i32 = arith.constant 0 : i32
    return %arg0, %arg2 : i32, i32
  }
  func.func @transform_1(%arg0: i32, %arg1: i32, %arg2: i32) -> (i32, i32) {
    %c0_i32 = arith.constant 0 : i32
    return %arg2, %arg1 : i32, i32
  }
  func.func @transform_2(%arg0: i32, %arg1: i32, %arg2: i32) -> (i32, i32) {
    %c0_i32 = arith.constant 0 : i32
    %c0_i32_0 = arith.constant 0 : i32
    return %c0_i32, %arg1 : i32, i32
  }
  func.func @transform_3(%arg0: i32, %arg1: i32, %arg2: i32) -> (i32, i32) {
    %c0_i32 = arith.constant 0 : i32
    return %arg0, %arg1 : i32, i32
  }
}

</mosaic_0001>

<bundles_post_ra>
// kernel: tpu_custom_call.1
= control target key start
LH: loop header
LB: loop body
LE: loop exit
PB: predicated region body
PF: predicated region fallthrough
CT: control target
= control target key end

     0   :  { %8 = vsyncpa [#allocation4], 0  ;;  %s1153_s0 = inlined_call_operand.hbm [shape: f32[128,128], index: 0, kind: input, shape index: {}]   ;;  %s1154_s1 = inlined_call_operand.hbm [shape: f32[128,128], index: 1, kind: input, shape index: {}]   ;;  %s1155_s2 = inlined_call_operand.vmem [shape: f32[1,128], index: 2, kind: input, shape index: {}]   ;;  %s1156_s3 = inlined_call_operand.hbm [shape: f32[128,128], index: 3, kind: output, shape index: {}]  }
   0x1   :  { %10 = vsyncpa [#allocation4 + $0x1], 0 }
   0x2   :  { %11 = vsyncpa [#allocation7], 0 }
   0x3   :  { %12 = vsyncpa [#allocation5], 0 }
   0x4   :  { %14 = vsyncpa [#allocation5 + $0x1], 0  ;;  %s949_s12 = smov 0   ;;  %s951_s13 = smov 0  }
   0x5   :  { %s953_s14 = smov 0   ;;  %s955_s15 = smov 0  }
   0x6   :  { %s957_s16 = smov 0   ;;  %s959_s17 = smov 0  }
   0x7 LB: > { %s584_s18 = sadd.s32 4294967295, %s920_s17   ;;  %s585_s19 = sadd.s32 4294967294, %s920_s17   ;;  %s920_s17 = sphi %s959_s17, %s20_s17   ;;  %s916_s16 = sphi %s957_s16, %s1178_s16   ;;  %s912_s15 = sphi %s955_s15, %s1177_s15   ;;  %s908_s14 = sphi %s953_s14, %s1176_s14   ;;  %s904_s13 = sphi %s951_s13, %s1175_s13   ;;  %s900_s12 = sphi %s949_s12, %s1174_s12  }
   0x8   : > { %p61_p0 = scmp.ne.s32.totalorder %s904_s13, %s900_s12  ;;  %p983_p1 = scmp.eq.s32.totalorder %s584_s18, 0 }
   0x9   : > { %p987_p2 = scmp.eq.s32.totalorder %s584_s18, 1  ;;  %p147_p3 = scmp.eq.s32.totalorder %s585_s19, 1 }
   0xa   : > { %p993_p4 = por %p983_p1, %p61_p0  ;;  %p586_p5 = scmp.ge.s32.totalorder %s920_s17, 1 }
   0xb   : > { %p998_p6 = por %p147_p3, %p61_p0  ;;  %p154_p7 = scmp.lt.s32.totalorder %s920_s17, 3 }
   0xc   : > { %s1162_s22 = scalar_select %p993_p4, 1, 0 }
   0xd   : > { %s1163_s23 = scalar_select %p998_p6, 1, 0 }
   0xe   : > { %p1003_p8 = pnand %p586_p5, %p154_p7  ;;  %s922_s25 = smov [#allocation6]  }
   0xf   : > { %s170_s26 = sshll.u32 %s922_s25, 4  ;;  %s39_s28 = sadd.s32 1, %s916_s16  ;;  %s171_s26 = int_to_ptr.vmem [resolvable:$true] %s170_s26 }
  0x10   : > { %p713_p9 = pneg %p1003_p8  ;;  %s793_s29 = scalar_lea.vmem %s171_s26, 2048 }
  0x11   : > { %p794_p13 = scmp.ne.s32.totalorder %s171_s26, %s793_s29  ;;  %p801_p5 = scmp.lt.s32.totalorder %s171_s26, %s171_s26 }
  0x12   : > { %p1012_p11 = pnand %p713_p9, %p983_p1  ;;  %p802_p7 = scmp.lt.s32.totalorder %s793_s29, %s793_s29 }
  0x14   : > { %p784_p12 = pneg %p1012_p11  ;;  %p803_p6 = por %p802_p7, %p801_p5 }
  0x16   : > { %p796_p0 = pnand %p794_p13, %p784_p12 }
  0x18   : > { %p797_p3 = pneg %p796_p0 }
  0x1a   : > { %p804_p4 = pnand %p803_p6, %p797_p3 }
  0x1c   : > { %807 = shalt.err (!%p804_p4)
}
  0x1d   : > { %s1158_s30 = smov 128   ;;  %s1159_s4 = smov 8  }
  0x1e   : > { %716 = dma.hbm_to_vmem [thread:$0]  (!%p1012_p11), %s1154_s1, 2048, %s171_s26, [#allocation7], %s1158_s30, %s1158_s30, %s1159_s4  }
  0x1f   : > { %p41_p4 = scmp.ge.s32.totalorder %s39_s28, 2  ;;  %s48_s7 = sadd.s32 1, %s908_s14 }
  0x20   : > { %p55_p6 = scmp.ne.s32.totalorder %s908_s14, %s904_s13  ;;  %p56_p9 = scmp.eq.s32.totalorder %s920_s17, 0 }
  0x21   : > { %s1180_s28 = smov (%p41_p4, %s39_s28), 0  ;;  %p726_p0 = scmp.lt.s32.totalorder %s920_s17, 2 }
  0x22   : > { %p1033_p12 = por %p56_p9, %p55_p6  ;;  %p1039_p13 = por %p987_p2, %p55_p6 }
  0x23   : > { %s43_s10 = ssub.s32 %s916_s16, %s1180_s28  ;;  %s190_s11 = sand.u32 1, %s908_s14  }
  0x24   : > { %p46_p11 = scmp.eq.s32.totalorder %s43_s10, 0  ;;  %s590_s18 = sshll.u32 %s190_s11, 6 }
  0x25   : > { %s603_s25 = sshll.u32 %s916_s16, 10  ;;  %s194_s5 = scalar_lea.vmem [#allocation3], %s590_s18 }
  0x26   : > { %s1048_s19 = scalar_select %p46_p11, %s908_s14, %s48_s7  }
  0x27   : > { %s201_s29 = scalar_lea.hbm %s1153_s0, %s603_s25  ;;  %s202_s6 = sshll.u32 %s194_s5, 4  ;;  %s203_s6 = int_to_ptr.vmem [resolvable:$true] %s202_s6 }
  0x28   : > { %p1056_p2 = pnand %p726_p0, %p1033_p12  ;;  %s191_s30 = scalar_lea.sflag [#allocation4], %s190_s11 }
  0x29   : > { %s821_s10 = scalar_lea.vmem %s203_s6, 1024  ;;  %s925_s7 = smov [#allocation3]  }
  0x2a   : > { %p810_p3 = pneg %p1056_p2  ;;  %p822_p5 = scmp.ne.s32.totalorder %s203_s6, %s821_s10 }
  0x2b   : > { %s826_s4 = sshll.u32 %s925_s7, 4  ;;  %s827_s4 = int_to_ptr.vmem [resolvable:$false] %s826_s4 }
  0x2c   : > { %p824_p7 = pnand %p822_p5, %p810_p3  ;;  %s828_s25 = scalar_lea.vmem %s827_s4, 2048 }
  0x2d   : > { %p829_p6 = scmp.lt.s32.totalorder %s203_s6, %s827_s4  ;;  %p830_p9 = scmp.lt.s32.totalorder %s828_s25, %s821_s10 }
  0x2e   : > { %p825_p4 = pneg %p824_p7 }
  0x2f   : > { %p831_p11 = por %p830_p9, %p829_p6 }
  0x31   : > { %p832_p10 = pnand %p831_p11, %p825_p4 }
  0x33   : > { %835 = shalt.err (!%p832_p10)
}
  0x34   : > { %s1169_s8 = smov 8   ;;  %s1170_s18 = smov 128  }
  0x35   : > { %720 = dma.hbm_to_vmem [thread:$0]  (!%p1056_p2), %s201_s29, 1024, %s203_s6, %s191_s30, %s1170_s18, %s1170_s18, %s1169_s8  }
  0x36   : > { %214 = sbr.rel (%p1003_p8) target bundleno = 311 (0x137), region = 32  ;;  %s1070_s11 = sand.u32 (!%p1003_p8), 1, %s904_s13  }
  0x37   : > { %s594_s4 = sshll.u32 (!%p1003_p8), %s1070_s11, 6  ;;  %s217_s26 = scalar_lea.sflag (!%p1003_p8), [#allocation4], %s1070_s11 }
  0x38   : > { %s1076_s27 = scalar_lea.vmem (!%p1003_p8), [#allocation3], %s594_s4  ;;  %p1171_p10 = scmp.ne.s32.totalorder (!%p1003_p8), %s1162_s22, 0 }
  0x3b   : > { %887 = dma.done.wait (%p1171_p10), %s217_s26, 1024  }
  0x3c   : > { %889 = vsyncadd (%p1171_p10), %s217_s26, 4294966272 }
  0x3d   : > { %891 = dma.done.wait (%p983_p1), [#allocation7], 2048  }
  0x3e   : > { %893 = vsyncadd (%p983_p1), [#allocation7], 4294965248  ;;  %v291_v0 = vld [vmem:[#allocation6 + $0x78] sm:$0xff]  ;;  %v290_v1 = vld [vmem:[#allocation6 + $0x70] sm:$0xff]  ;;  %s249_s24 = scalar_lea.vmem [#allocation8], %s594_s4  ;;  %s604_s29 = sshll.u32 %s912_s15, 10 }
  0x3f   : > { %629 = vmatprep.subr.mxu0 %v291_v0  ;;  %673 = vmatprep.subr.mxu1 %v291_v0  ;;  %v289_v2 = vld [vmem:[#allocation6 + $0x68] sm:$0xff]  ;;  %v288_v3 = vld [vmem:[#allocation6 + $0x60] sm:$0xff]  ;;  %v287_v4 = vld [vmem:[#allocation6 + $0x58] sm:$0xff]  ;;  %s470_s30 = sshll.u32 %s249_s24, 4  ;;  %s1105_s21 = scalar_lea.hbm %s1156_s3, %s604_s29  ;;  %s1100_s30 = int_to_ptr.vmem [resolvable:$true] %s470_s30 }
  0x40   : > { %630 = vmatpush3.msra.mxu0 %v291_v0  ;;  %689 = vmatpush3.msra.mxu1 %v291_v0  ;;  %v286_v5 = vld [vmem:[#allocation6 + $0x50] sm:$0xff]  ;;  %v285_v6 = vld [vmem:[#allocation6 + $0x48] sm:$0xff]  ;;  %v284_v7 = vld [vmem:[#allocation6 + $0x40] sm:$0xff]  ;;  %s456_s15 = scalar_lea.sflag [#allocation5], %s1070_s11  ;;  %s836_s10 = scalar_lea.vmem %s1100_s30, 1024 }
  0x41   : > { %631 = vmatprep.subr.mxu0 %v290_v1  ;;  %674 = vmatprep.subr.mxu1 %v290_v1  ;;  %v283_v8 = vld [vmem:[#allocation6 + $0x38] sm:$0xff]  ;;  %v282_v9 = vld [vmem:[#allocation6 + $0x30] sm:$0xff]  ;;  %v281_v10 = vld [vmem:[#allocation6 + $0x28] sm:$0xff]  ;;  %p837_p1 = scmp.ne.s32.totalorder %s1100_s30, %s836_s10  ;;  %s926_s7 = smov [#allocation8]  }
  0x42   : > { %632 = vmatpush3.msra.mxu0 %v290_v1  ;;  %690 = vmatpush3.msra.mxu1 %v290_v1  ;;  %v280_v11 = vld [vmem:[#allocation6 + $0x20] sm:$0xff]  ;;  %v279_v12 = vld [vmem:[#allocation6 + $0x18] sm:$0xff]  ;;  %v278_v13 = vld [vmem:[#allocation6 + $0x10] sm:$0xff]  ;;  %s840_s25 = sshll.u32 %s926_s7, 4  ;;  %s841_s25 = int_to_ptr.vmem [resolvable:$false] %s840_s25 }
  0x43   : > { %633 = vmatprep.subr.mxu0 %v289_v2  ;;  %675 = vmatprep.subr.mxu1 %v289_v2  ;;  %v277_v14 = vld [vmem:[#allocation6 + $0x8] sm:$0xff]  ;;  %v276_v15 = vld [vmem:[#allocation6] sm:$0xff]  ;;  %v270_v20 = vld [vmem:[%s1076_s27 + $0x10] sm:$0xff]  ;;  %p838_p8 = pnand %p837_p1, %p1039_p13  ;;  %s842_s8 = scalar_lea.vmem %s841_s25, 2048 }
  0x44   : > { %634 = vmatpush3.msra.mxu0 %v289_v2  ;;  %691 = vmatpush3.msra.mxu1 %v289_v2  ;;  %v268_v16 = vld [vmem:[%s1076_s27] sm:$0xff]  ;;  %v269_v18 = vld [vmem:[%s1076_s27 + $0x8] sm:$0xff]  ;;  %v274_v21 = vld [vmem:[%s1076_s27 + $0x30] sm:$0xff]  ;;  %p843_p0 = scmp.lt.s32.totalorder %s1100_s30, %s841_s25  ;;  %p844_p2 = scmp.lt.s32.totalorder %s842_s8, %s836_s10 }
  0x45   : > { %635 = vmatprep.subr.mxu0 %v288_v3  ;;  %676 = vmatprep.subr.mxu1 %v288_v3  ;;  %v272_v17 = vld [vmem:[%s1076_s27 + $0x20] sm:$0xff]  ;;  %v273_v19 = vld [vmem:[%s1076_s27 + $0x28] sm:$0xff]  ;;  %v271_v22 = vld [vmem:[%s1076_s27 + $0x18] sm:$0xff]  ;;  %p839_p12 = pneg %p838_p8 }
  0x46   : > { %636 = vmatpush3.msra.mxu0 %v288_v3  ;;  %692 = vmatpush3.msra.mxu1 %v288_v3  ;;  %v275_v23 = vld [vmem:[%s1076_s27 + $0x38] sm:$0xff]  ;;  %v597_v24 = vld [vmem:[%s1155_s2] ss:$0 sm:$0xff]  ;;  %p845_p3 = por %p844_p2, %p843_p0 }
  0x47   : > { %637 = vmatprep.subr.mxu0 %v287_v4  ;;  %677 = vmatprep.subr.mxu1 %v287_v4 }
  0x48   : > { %638 = vmatpush3.msra.mxu0 %v287_v4  ;;  %693 = vmatpush3.msra.mxu1 %v287_v4  ;;  %p846_p5 = pnand %p845_p3, %p839_p12 }
  0x49   : > { %639 = vmatprep.subr.mxu0 %v286_v5  ;;  %678 = vmatprep.subr.mxu1 %v286_v5 }
  0x4a   : > { %640 = vmatpush3.msra.mxu0 %v286_v5  ;;  %694 = vmatpush3.msra.mxu1 %v286_v5 }
  0x4b   : > { %641 = vmatprep.subr.mxu0 %v285_v6  ;;  %679 = vmatprep.subr.mxu1 %v285_v6 }
  0x4c   : > { %642 = vmatpush3.msra.mxu0 %v285_v6  ;;  %695 = vmatpush3.msra.mxu1 %v285_v6 }
  0x4d   : > { %643 = vmatprep.subr.mxu0 %v284_v7  ;;  %680 = vmatprep.subr.mxu1 %v284_v7 }
  0x4e   : > { %644 = vmatpush3.msra.mxu0 %v284_v7  ;;  %696 = vmatpush3.msra.mxu1 %v284_v7 }
  0x4f   : > { %645 = vmatprep.subr.mxu0 %v283_v8  ;;  %681 = vmatprep.subr.mxu1 %v283_v8 }
  0x50   : > { %646 = vmatpush3.msra.mxu0 %v283_v8  ;;  %697 = vmatpush3.msra.mxu1 %v283_v8 }
  0x51   : > { %647 = vmatprep.subr.mxu0 %v282_v9  ;;  %682 = vmatprep.subr.mxu1 %v282_v9 }
  0x52   : > { %648 = vmatpush3.msra.mxu0 %v282_v9  ;;  %698 = vmatpush3.msra.mxu1 %v282_v9 }
  0x53   : > { %649 = vmatprep.subr.mxu0 %v281_v10  ;;  %683 = vmatprep.subr.mxu1 %v281_v10 }
  0x54   : > { %650 = vmatpush3.msra.mxu0 %v281_v10  ;;  %699 = vmatpush3.msra.mxu1 %v281_v10 }
  0x55   : > { %651 = vmatprep.subr.mxu0 %v280_v11  ;;  %684 = vmatprep.subr.mxu1 %v280_v11 }
  0x56   : > { %652 = vmatpush3.msra.mxu0 %v280_v11  ;;  %700 = vmatpush3.msra.mxu1 %v280_v11 }
  0x57   : > { %653 = vmatprep.subr.mxu0 %v279_v12  ;;  %685 = vmatprep.subr.mxu1 %v279_v12 }
  0x58   : > { %654 = vmatpush3.msra.mxu0 %v279_v12  ;;  %701 = vmatpush3.msra.mxu1 %v279_v12 }
  0x59   : > { %655 = vmatprep.subr.mxu0 %v278_v13  ;;  %686 = vmatprep.subr.mxu1 %v278_v13 }
  0x5a   : > { %656 = vmatpush3.msra.mxu0 %v278_v13  ;;  %702 = vmatpush3.msra.mxu1 %v278_v13 }
  0x5b   : > { %657 = vmatprep.subr.mxu0 %v277_v14  ;;  %687 = vmatprep.subr.mxu1 %v277_v14 }
  0x5c   : > { %658 = vmatpush3.msra.mxu0 %v277_v14  ;;  %703 = vmatpush3.msra.mxu1 %v277_v14 }
  0x5d   : > { %659 = vmatprep.subr.mxu0 %v276_v15  ;;  %688 = vmatprep.subr.mxu1 %v276_v15 }
  0x5e   : > { %660 = vmatpush3.msra.mxu0 %v276_v15  ;;  %704 = vmatpush3.msra.mxu1 %v276_v15 }
  0x5f   : > { %661 = vmatprep.mubr.f32.mxu0 %v268_v16  ;;  %667 = vmatprep.mubr.f32.mxu1 %v272_v17 }
  0x60   : > { %662 = vmatmul.mubr.f32.vlgmr.msra.gmra.mxu0 %v269_v18  ;;  %668 = vmatmul.mubr.f32.vlgmr.msra.gmra.mxu1 %v273_v19 }
  0x61   : > { %664 = vmatprep.mubr.f32.mxu0 %v270_v20  ;;  %670 = vmatprep.mubr.f32.mxu1 %v274_v21 }
  0x64   : > { %665 = vmatmul.mubr.f32.gmra.mxu0 %v271_v22  ;;  %671 = vmatmul.mubr.f32.gmra.mxu1 %v275_v23 }
 0x120   : > { %v663_v25 = vpop.f32.mrf.mxu0  ;;  %v669_v26 = vpop.f32.mrf.mxu1 }
 0x121   : > { %v440_v27 = vadd.f32 %v663_v25, %v597_v24  ;;  %v444_v28 = vadd.f32 %v669_v26, %v597_v24 }
 0x122   : > { %v366_v29 = vpop.f32.mrf.mxu0  ;;  %v386_v30 = vpop.f32.mrf.mxu1 }
 0x123   : > { %448 = vst [vmem:[%s249_s24 + $0x8] sm:$0xff] %v440_v27  ;;  %452 = vst [vmem:[%s249_s24 + $0x28] sm:$0xff] %v444_v28  ;;  %v439_v31 = vadd.f32 %v597_v24, %v366_v29  ;;  %v443_v32 = vadd.f32 %v597_v24, %v386_v30 }
 0x124   : > { %v666_v33 = vpop.f32.mrf.mxu0  ;;  %v672_v34 = vpop.f32.mrf.mxu1 }
 0x125   : > { %447 = vst [vmem:[%s249_s24] sm:$0xff] %v439_v31  ;;  %451 = vst [vmem:[%s249_s24 + $0x20] sm:$0xff] %v443_v32  ;;  %v442_v35 = vadd.f32 %v666_v33, %v597_v24  ;;  %v446_v36 = vadd.f32 %v672_v34, %v597_v24 }
 0x126   : > { %v376_v37 = vpop.f32.mrf.mxu0  ;;  %v396_v38 = vpop.f32.mrf.mxu1 }
 0x127   : > { %450 = vst [vmem:[%s249_s24 + $0x18] sm:$0xff] %v442_v35  ;;  %454 = vst [vmem:[%s249_s24 + $0x38] sm:$0xff] %v446_v36  ;;  %v441_v39 = vadd.f32 %v597_v24, %v376_v37  ;;  %v445_v40 = vadd.f32 %v597_v24, %v396_v38 }
 0x129   : > { %449 = vst [vmem:[%s249_s24 + $0x10] sm:$0xff] %v441_v39  ;;  %453 = vst [vmem:[%s249_s24 + $0x30] sm:$0xff] %v445_v40 }
 0x12a   : > { %849 = shalt.err (!%p846_p5)
}
 0x12b   : > { %s850_s18 = scalar_lea.hbm %s1105_s21, 1024  ;;  %s854_s27 = scalar_lea.hbm %s1156_s3, 2048 }
 0x12c   : > { %p851_p7 = scmp.ne.s32.totalorder %s1105_s21, %s850_s18  ;;  %p855_p9 = scmp.lt.s32.totalorder %s1105_s21, %s1156_s3 }
 0x12d   : > { %p856_p11 = scmp.lt.s32.totalorder %s854_s27, %s850_s18 }
 0x12e   : > { %p852_p4 = pnand %p851_p7, %p1039_p13 }
 0x12f   : > { %p857_p10 = por %p856_p11, %p855_p9 }
 0x130   : > { %p853_p6 = pneg %p852_p4 }
 0x132   : > { %p858_p1 = pnand %p857_p10, %p853_p6 }
 0x134   : > { %861 = shalt.err (!%p858_p1)
}
 0x135   : > { %s927_s24 = smov 128   ;;  %s928_s29 = smov 8  }
 0x136   : > { %711 = dma.vmem_to_hbm [thread:$0]  (%p1039_p13), %s1100_s30, 1024, %s1105_s21, %s456_s15, %s927_s24, %s927_s24, %s928_s29  }
 0x137 PF: > { %s485_s5 = sand.u32 1, %s900_s12   ;;  %p1172_p8 = scmp.ne.s32.totalorder %s1163_s23, 0 }
 0x138   : > { %p1173_p12 = scmp.ge.s32.totalorder %s920_s17, 2  ;;  %s486_s6 = scalar_lea.sflag [#allocation5], %s485_s5 }
 0x13a   : > { %p722_p0 = pnand %p1173_p12, %p1172_p8 }
 0x13c   : > { %p723_p2 = pneg %p722_p0 }
 0x13e   : > { %895 = dma.done.wait (%p723_p2), %s486_s6, 1024  }
 0x13f   : > { %897 = vsyncadd (%p723_p2), %s486_s6, 4294966272  ;;  %s20_s17 = sadd.s32 1, %s920_s17   ;;  %s1174_s12 = smov %s904_s13 }
 0x140   : > { %p17_p3 = scmp.ge.s32.totalorder %s20_s17, 4   ;;  %s1175_s13 = smov %s908_s14 }
 0x141   : > { %s1176_s14 = smov %s1048_s19  ;;  %s1177_s15 = smov %s916_s16 }
 0x142   : > { %s1178_s16 = smov %s1180_s28  ;;  %19 = sbr.rel (!%p17_p3) target bundleno = 7 (0x7), region = 93 }
 0x147   :  { %491 = vsyncpa [#allocation4], 1 }
 0x148   :  { %493 = vsyncpa [#allocation4 + $0x1], 1 }
 0x149   :  { %494 = vsyncpa [#allocation7], 1 }
 0x14a   :  { %495 = vsyncpa [#allocation5], 1 }
 0x14b   :  { %497 = vsyncpa [#allocation5 + $0x1], 1 }

</bundles_post_ra>
